<compile_context>
chip_gen: v5e
topology: v5e:2x2
jax: 0.10.0
libtpu: 0.0.40
codegen_flags: <defaults>
</compile_context>

<pallas_src>
import math
import functools

import jax
import jax.numpy as jnp
from jax.experimental import pallas as pl
from jax.experimental.pallas import tpu as pltpu


def _round_up(x: int, m: int) -> int:
    return ((x + m - 1) // m) * m


def _pad2(x, rows: int, cols: int):
    """Zero-pad a 2-D array to (rows, cols) in f32; no-op if already that shape."""
    x = x.astype(jnp.float32)
    r, c = x.shape
    if r == rows and c == cols:
        return x
    return jnp.pad(x, ((0, rows - r), (0, cols - c)))


# ----------------------------------------------------------------------------- kernel

def _fused_kernel(w_ref, u_ref, z_ref, sym_ref, adj_ref, pmat_ref, logits_ref,
                  *, n_symbols):
    """Fused prior-graph sampler + transition-prob normalizer + one-hot logits matmul.

    w_ref      : VMEM (Sp, C)   f32  Gamma prior sample (zero-padded rows are inert)
    u_ref      : VMEM (Sp, Sp)  f32  uniforms in [0, 1) for the Bernoulli edge draws
    z_ref      : VMEM (Mp, Sp)  f32  hard one-hot random walk, flattened over (B, T)
    sym_ref    : VMEM (Sp, V)   f32  schema -> word emission table
    adj_ref    : VMEM (Sp, Sp)  f32  symmetric 0/1 adjacency, zero diagonal
    pmat_ref   : VMEM (Sp, Sp)  f32  row-normalized transition probabilities
    logits_ref : VMEM (Mp, V)   f32  logits = z @ symbols
    """
    # edge_prob = 1 - exp(-w w^T)   (MXU matmul + EUP exp)
    w = w_ref[...]
    wwt = jax.lax.dot_general(
        w, w, dimension_numbers=(((1,), (1,)), ((), ())),
        preferred_element_type=jnp.float32)                        # [Sp, Sp]
    edge_prob = 1.0 - jnp.exp(-wwt)

    # Dense strict-upper-triangle Bernoulli draw (no gather/scatter), then symmetrize.
    # Zero-padded rows/cols have edge_prob == 0, hence never produce an edge.
    row = jax.lax.broadcasted_iota(jnp.int32, edge_prob.shape, 0)
    col = jax.lax.broadcasted_iota(jnp.int32, edge_prob.shape, 1)
    take = jnp.logical_and(row < col, edge_prob > u_ref[...])      # offset=1: no diagonal
    edges = take.astype(jnp.float32)
    adj = edges + edges.T
    adj_ref[...] = adj

    # get_transition_prob_matrix: row-normalize; empty rows fall back to uniform 1/S
    # (over the REAL symbol count, not the padded width).
    row_sum = jnp.sum(adj, axis=-1, keepdims=True)                 # [Sp, 1]
    norm = jnp.where(row_sum > 0.0, row_sum, 1.0)
    inv = 1.0 / norm
    pi = jnp.float32(1.0 / n_symbols)
    pmat_ref[...] = jnp.where(row_sum > 0.0, adj * inv, pi)

    # logits = z @ symbols (hard one-hot => MXU row-select; padded z rows are all-zero)
    logits_ref[...] = jnp.dot(z_ref[...], sym_ref[...],
                              preferred_element_type=jnp.float32)


# ----------------------------------------------------------------------------- wrapper

def fused_forward_pallas(w, u, z_flat, symbols, *, n_symbols):
    """One fused pallas_call: adjacency [S,S], transition matrix [S,S], logits [M,V]."""
    S, C = w.shape
    M, _ = z_flat.shape
    _, V = symbols.shape

    # Sublane (second-to-last) dims rounded to the f32 quantum of 8; lane dims kept exact.
    Sp = _round_up(max(S, 8), 8)
    Mp = _round_up(max(M, 8), 8)

    w_p = _pad2(w, Sp, C)
    u_p = _pad2(u, Sp, Sp)
    z_p = _pad2(z_flat, Mp, Sp)
    sym_p = _pad2(symbols, Sp, V)

    adj_p, pmat_p, logits_p = pl.pallas_call(
        functools.partial(_fused_kernel, n_symbols=n_symbols),
        out_shape=(jax.ShapeDtypeStruct((Sp, Sp), jnp.float32),
                   jax.ShapeDtypeStruct((Sp, Sp), jnp.float32),
                   jax.ShapeDtypeStruct((Mp, V), jnp.float32)),
        in_specs=[pl.BlockSpec(memory_space=pltpu.MemorySpace.VMEM)] * 4,
        out_specs=(pl.BlockSpec(memory_space=pltpu.MemorySpace.VMEM),
                   pl.BlockSpec(memory_space=pltpu.MemorySpace.VMEM),
                   pl.BlockSpec(memory_space=pltpu.MemorySpace.VMEM)),
    )(w_p, u_p, z_p, sym_p)

    adj = adj_p if Sp == S else adj_p[:S, :S]
    pmat = pmat_p if Sp == S else pmat_p[:S, :S]
    logits = logits_p if Mp == M else logits_p[:M, :]
    return adj, pmat, logits


# ----------------------------------------------------------------------------- model

def make_synthetic_schema_params(n_symbols, voc_dim, n_communities, default_rate=3.0):
    """Deterministic parameter init mirroring SyntheticSchema.__init__ (vectorized)."""
    assert voc_dim >= 2 * n_symbols
    rows = jnp.arange(n_symbols)
    symbols = (jnp.zeros((n_symbols, voc_dim), jnp.float32)
               .at[rows, 2 * rows].set(0.5)
               .at[rows, 2 * rows + 1].set(0.5))      # schema s -> words (2s, 2s+1), p=0.5
    default_shape = math.sqrt(2.0 / (n_communities * (n_symbols - 1))) * default_rate
    return dict(symbols=symbols,
                ground_truth_word_prob=symbols,
                default_rate=float(default_rate),
                default_shape=float(default_shape),
                n_symbols=n_symbols,
                voc_dim=voc_dim,
                n_communities=n_communities)


@functools.partial(jax.jit, static_argnames=("n_symbols", "voc_dim", "n_communities"))
def synthetic_schema_forward(tokens, symbols, key, *, n_symbols, voc_dim, n_communities,
                             default_rate=3.0):
    """Forward pass. tokens: int32 [B, T]. Returns the same 7-tuple as the torch module."""
    B, T = tokens.shape
    S, C = n_symbols, n_communities

    k_gamma, k_edge, k_walk = jax.random.split(key, 3)

    # -- sample_gamma_var_prior: Gamma(concentration=default_shape, rate=default_rate)
    a = math.sqrt(2.0 / (C * (S - 1))) * default_rate
    w = jax.random.gamma(k_gamma, a, shape=(S, C), dtype=jnp.float32) / default_rate

    # Uniforms for the strict-triu Bernoulli edge draws (passed into the kernel).
    u = jax.random.uniform(k_edge, (S, S), dtype=jnp.float32)

    # TODO(synk): encoder(input_enc, adj_matrix, tau_rw, (p_matrix, None), ...) is external;
    # stand-in z_post is a hard one-hot walk from a uniform categorical over symbols.
    z_idx = jax.random.categorical(k_walk, jnp.zeros((B, T, S), jnp.float32))
    z = jax.nn.one_hot(z_idx, S, dtype=jnp.float32)                 # [B, T, S]

    # Fused kernel: prior graph + transition matrix + one-hot logits matmul.
    adj_matrix, p_matrix, logits = fused_forward_pallas(
        w, u, z.reshape(-1, S), symbols, n_symbols=S)
    del p_matrix    # consumed only by the external encoder (stand-in)

    # TODO(synk): graph_generator / graph_generator.get_kl are external; kl terms are 0.
    kl_graph = jnp.float32(0.0)
    kl_rws = jnp.float32(0.0)
    kl_0 = jnp.float32(0.0)
    walk_prob_aux = None

    return logits, z, kl_rws, kl_0, kl_graph, walk_prob_aux, adj_matrix


# ----------------------------------------------------------------------------- main

if __name__ == "__main__":
    B, T = 2, 8          # batch, fix_len (== rw_length)
    S, V, C = 8, 32, 4   # n_symbols, voc_dim, n_communities

    params = make_synthetic_schema_params(S, V, C)
    key = jax.random.PRNGKey(0)
    k_tok, k_fwd = jax.random.split(key)

    tokens = jax.random.randint(k_tok, (B, T), 0, V, dtype=jnp.int32)   # input_enc[0]

    out = synthetic_schema_forward(
        tokens, params["symbols"], k_fwd,
        n_symbols=S, voc_dim=V, n_communities=C,
        default_rate=params["default_rate"])
    out = jax.block_until_ready(out)
    logits, z, kl_rws, kl_0, kl_graph, walk_prob_aux, adj_matrix = out

    # shapes
    assert logits.shape == (B * T, V)
    assert z.shape == (B, T, S)
    assert adj_matrix.shape == (S, S)

    # adjacency structure: symmetric, binary, zero diagonal (triu offset=1 semantics)
    assert bool(jnp.all(adj_matrix == adj_matrix.T))
    assert bool(jnp.all((adj_matrix == 0.0) | (adj_matrix == 1.0)))
    assert bool(jnp.all(jnp.diag(adj_matrix) == 0.0))

    # logits == one-hot matmul reference
    z_flat = z.reshape(B * T, S)
    ref_logits = z_flat @ params["symbols"]
    assert jnp.allclose(logits, ref_logits, atol=1e-6), "logits mismatch"

    # fused kernel vs. plain-JAX reference (deterministic paths: normalization + logits,
    # plus structural adjacency checks — avoids flaky threshold-edge comparisons).
    w_t = jax.random.gamma(jax.random.PRNGKey(1), 0.7, shape=(S, C), dtype=jnp.float32)
    u_t = jax.random.uniform(jax.random.PRNGKey(2), (S, S), dtype=jnp.float32)
    zidx_t = jax.random.randint(jax.random.PRNGKey(3), (B * T,), 0, S, dtype=jnp.int32)
    z_t = jax.nn.one_hot(zidx_t, S, dtype=jnp.float32)

    fused = jax.jit(functools.partial(fused_forward_pallas, n_symbols=S))
    adj_t, pmat_t, logits_t = jax.block_until_ready(
        fused(w_t, u_t, z_t, params["symbols"]))

    assert bool(jnp.all(adj_t == adj_t.T))
    assert bool(jnp.all((adj_t == 0.0) | (adj_t == 1.0)))
    assert bool(jnp.all(jnp.diag(adj_t) == 0.0))

    row_sum = jnp.sum(adj_t, axis=-1, keepdims=True)
    cond = (row_sum > 0.0).astype(jnp.float32)
    ref_pm = cond * (adj_t / (row_sum + (1.0 - cond))) + (1.0 - cond) * (1.0 / S)
    assert jnp.allclose(pmat_t, ref_pm, atol=1e-6), "transition-prob mismatch"
    assert jnp.allclose(logits_t, z_t @ params["symbols"], atol=1e-6), "fused logits mismatch"

    print("KERNEL_OK")
</pallas_src>

<mosaic_0001>
module attributes {stable_mosaic.version = 11 : i64} {
  func.func @_fused_kernel(%arg0: memref<8x4xf32, #tpu.memory_space<vmem>>, %arg1: memref<8x8xf32, #tpu.memory_space<vmem>>, %arg2: memref<16x8xf32, #tpu.memory_space<vmem>>, %arg3: memref<8x32xf32, #tpu.memory_space<vmem>>, %arg4: memref<8x8xf32, #tpu.memory_space<vmem>>, %arg5: memref<8x8xf32, #tpu.memory_space<vmem>>, %arg6: memref<16x32xf32, #tpu.memory_space<vmem>>) attributes {dimension_semantics = [], scalar_prefetch = 0 : i64, scratch_operands = 0 : i64, tpu.core_type = #tpu.core_type<tc>} {
    %c0 = arith.constant 0 : index
    %c0_0 = arith.constant 0 : index
    %0 = vector.load %arg0[%c0, %c0_0] : memref<8x4xf32, #tpu.memory_space<vmem>>, vector<8x4xf32>
    %cst = arith.constant dense<0.000000e+00> : vector<8x8xf32>
    %1 = tpu.matmul %0, %0, %cst {dimension_numbers = #tpu.dot_dimension_numbers<[1], [1], [0], [0], [0, 0, 1, 0], [], []>} : vector<8x4xf32>, vector<8x4xf32>, vector<8x8xf32> -> vector<8x8xf32>
    %cst_1 = arith.constant 0.000000e+00 : f32
    %2 = vector.broadcast %cst_1 : f32 to vector<8x8xf32>
    %3 = arith.subf %2, %1 : vector<8x8xf32>
    %4 = math.exp %3 : vector<8x8xf32>
    %cst_2 = arith.constant 1.000000e+00 : f32
    %5 = vector.broadcast %cst_2 : f32 to vector<8x8xf32>
    %6 = arith.subf %5, %4 : vector<8x8xf32>
    %7 = tpu.iota {dimensions = array<i32: 0>} : vector<8x8xi32>
    %8 = tpu.iota {dimensions = array<i32: 1>} : vector<8x8xi32>
    %9 = arith.cmpi slt, %7, %8 : vector<8x8xi32>
    %c0_3 = arith.constant 0 : index
    %c0_4 = arith.constant 0 : index
    %10 = vector.load %arg1[%c0_3, %c0_4] : memref<8x8xf32, #tpu.memory_space<vmem>>, vector<8x8xf32>
    %11 = arith.cmpf ogt, %6, %10 : vector<8x8xf32>
    %12 = arith.andi %9, %11 : vector<8x8xi1>
    %13 = arith.extui %12 : vector<8x8xi1> to vector<8x8xi32>
    %14 = arith.sitofp %13 : vector<8x8xi32> to vector<8x8xf32>
    %15 = tpu.transpose %14, [1, 0] : vector<8x8xf32> -> vector<8x8xf32>
    %16 = arith.addf %14, %15 : vector<8x8xf32>
    %c0_5 = arith.constant 0 : index
    %c0_6 = arith.constant 0 : index
    %17 = vector.load %arg4[%c0_5, %c0_6] : memref<8x8xf32, #tpu.memory_space<vmem>>, vector<8x8xf32>
    tpu.vector_store %arg4[%c0_5, %c0_6], %16 {strides = array<i32>} : memref<8x8xf32, #tpu.memory_space<vmem>>, vector<8x8xf32>,
    %cst_7 = arith.constant dense<0.000000e+00> : vector<8xf32>
    %18 = vector.multi_reduction <add>, %16, %cst_7 [1] : vector<8x8xf32> to vector<8xf32>
    %19 = vector.shape_cast %18 : vector<8xf32> to vector<8x1xf32>
    %cst_8 = arith.constant 0.000000e+00 : f32
    %20 = vector.broadcast %cst_8 : f32 to vector<8x1xf32>
    %21 = arith.cmpf ogt, %19, %20 : vector<8x1xf32>
    %cst_9 = arith.constant 1.000000e+00 : f32
    %22 = vector.broadcast %cst_9 : f32 to vector<8x1xf32>
    %23 = arith.select %21, %19, %22 : vector<8x1xi1>, vector<8x1xf32>
    %cst_10 = arith.constant 1.000000e+00 : f32
    %24 = vector.broadcast %cst_10 : f32 to vector<8x1xf32>
    %25 = arith.divf %24, %23 : vector<8x1xf32>
    %cst_11 = arith.constant 0.000000e+00 : f32
    %26 = vector.broadcast %cst_11 : f32 to vector<8x1xf32>
    %27 = arith.cmpf ogt, %19, %26 : vector<8x1xf32>
    %28 = vector.broadcast %25 : vector<8x1xf32> to vector<8x8xf32>
    %29 = arith.mulf %16, %28 : vector<8x8xf32>
    %cst_12 = arith.constant 1.250000e-01 : f32
    %30 = vector.shape_cast %27 : vector<8x1xi1> to vector<8x1xi1>
    %31 = vector.broadcast %30 : vector<8x1xi1> to vector<8x8xi1>
    %32 = vector.broadcast %cst_12 : f32 to vector<8x8xf32>
    %33 = arith.select %31, %29, %32 : vector<8x8xi1>, vector<8x8xf32>
    %c0_13 = arith.constant 0 : index
    %c0_14 = arith.constant 0 : index
    %34 = vector.load %arg5[%c0_13, %c0_14] : memref<8x8xf32, #tpu.memory_space<vmem>>, vector<8x8xf32>
    tpu.vector_store %arg5[%c0_13, %c0_14], %33 {strides = array<i32>} : memref<8x8xf32, #tpu.memory_space<vmem>>, vector<8x8xf32>,
    %c0_15 = arith.constant 0 : index
    %c0_16 = arith.constant 0 : index
    %35 = vector.load %arg2[%c0_15, %c0_16] : memref<16x8xf32, #tpu.memory_space<vmem>>, vector<16x8xf32>
    %c0_17 = arith.constant 0 : index
    %c0_18 = arith.constant 0 : index
    %36 = vector.load %arg3[%c0_17, %c0_18] : memref<8x32xf32, #tpu.memory_space<vmem>>, vector<8x32xf32>
    %cst_19 = arith.constant dense<0.000000e+00> : vector<16x32xf32>
    %37 = tpu.matmul %35, %36, %cst_19 {dimension_numbers = #tpu.dot_dimension_numbers<[1], [0], [0], [1], [0, 0, 1, 1], [], []>} : vector<16x8xf32>, vector<8x32xf32>, vector<16x32xf32> -> vector<16x32xf32>
    %c0_20 = arith.constant 0 : index
    %c0_21 = arith.constant 0 : index
    %38 = vector.load %arg6[%c0_20, %c0_21] : memref<16x32xf32, #tpu.memory_space<vmem>>, vector<16x32xf32>
    tpu.vector_store %arg6[%c0_20, %c0_21], %37 {strides = array<i32>} : memref<16x32xf32, #tpu.memory_space<vmem>>, vector<16x32xf32>,
    return
  }
}

</mosaic_0001>

<bundles_post_ra>
// kernel: synthetic_schema_forward.5
= control target key start
LH: loop header
LB: loop body
LE: loop exit
PB: predicated region body
PF: predicated region fallthrough
CT: control target
= control target key end

     0   :  { %12 = vsyncpa [#allocation3], 0  ;;  %vm23_vm0 = vcmask 31744   ;;  %s369_s0 = inlined_call_operand.vmem [shape: f32[8,4], index: 0, kind: input, shape index: {}]   ;;  %s370_s1 = inlined_call_operand.vmem [shape: f32[8,8], index: 1, kind: input, shape index: {}]   ;;  %s371_s2 = inlined_call_operand.vmem [shape: f32[16,8], index: 2, kind: input, shape index: {}]   ;;  %s372_s3 = inlined_call_operand.vmem [shape: f32[8,32], index: 3, kind: input, shape index: {}]   ;;  %s373_s4 = inlined_call_operand.hbm [shape: f32[8,8], index: 4, kind: output, shape index: {0}]   ;;  %s374_s5 = inlined_call_operand.hbm [shape: f32[8,8], index: 5, kind: output, shape index: {1}]   ;;  %s375_s6 = inlined_call_operand.hbm [shape: f32[16,32], index: 6, kind: output, shape index: {2}]  }
   0x1   :  { %v22_v0 = vld [vmem:[%s369_s0] sm:$0xff] }
   0x2   :  { %13 = vsyncpa [#allocation5], 0  ;;  %205 = vmatpush.xpose.msk.msra.mxu0 %vm23_vm0, %v22_v0  ;;  %v51_v4 = vlaneseq  ;;  %v56_v8 = vld [vmem:[%s370_s1] sm:$0xff]  ;;  %v297_v10 = vmov 0.0   ;;  %v122_v13 = vld [vmem:[%s371_s2 + $0x8] sm:$0xff]  ;;  %vm94_vm4 = vcmask 64512  }
   0x3   :  { %v123_v12 = vld [vmem:[%s372_s3] sm:$0xff]  ;;  %s163_s30 = sshll.u32 %s373_s4, 4  ;;  %s298_s7 = smov [#allocation2]   ;;  %vm153_vm5 = vcmask 261120   ;;  %s164_s30 = int_to_ptr.hbm [resolvable:$true] %s163_s30 }
   0x4   :  { %v52_v5 = vshrl.u32 %v51_v4, 7  ;;  %v54_v6 = vand.u32 127, %v51_v4  ;;  %v121_v14 = vld [vmem:[%s371_s2] sm:$0xff]  ;;  %210 = vmatpush.msra.mxu2 %v123_v12  ;;  %145 = vmatpush.msra.mxu1 %v123_v12  ;;  %s161_s2 = sshll.u32 %s298_s7, 4  ;;  %s299_s4 = smov [#allocation4]   ;;  %s162_s2 = int_to_ptr.vmem [resolvable:$true] %s161_s2 }
   0x5   :  { %206 = vmatmul.msk.f32.vlgmr.msra.gmra.mxu0 %vm23_vm0, %v22_v0  ;;  %209 = vmatmul.msk.f32.vlgmr.msra.gmra.mxu2 %vm94_vm4, %v122_v13  ;;  %s172_s8 = sshll.u32 %s299_s4, 4  ;;  %s174_s11 = sshll.u32 %s374_s5, 4  ;;  %s173_s8 = int_to_ptr.vmem [resolvable:$true] %s172_s8  ;;  %s175_s11 = int_to_ptr.hbm [resolvable:$true] %s174_s11 }
   0x6   :  { %vm55_vm1 = vcmp.lt.s32.totalorder %v52_v5, %v54_v6  ;;  %208 = vmatmul.msk.f32.vlgmr.msra.gmra.mxu1 %vm94_vm4, %v121_v14  ;;  %s300_s12 = smov [#allocation6]   ;;  %s184_s16 = sshll.u32 %s375_s6, 4  ;;  %s185_s16 = int_to_ptr.hbm [resolvable:$true] %s184_s16 }
   0x7   :  { %s182_s13 = sshll.u32 %s300_s12, 4  ;;  %s301_s5 = smov 128   ;;  %s183_s13 = int_to_ptr.vmem [resolvable:$true] %s182_s13 }
   0x8   :  { %s302_s17 = smov 8  }
  0x82   :  { %v44_v1 = vpop.f32.mrf.mxu0 }
  0x83   :  { %v47_v2 = vsub.f32 0.0, %v44_v1  ;;  %v147_v18 = vpop.f32.mrf.mxu1 }
  0x84   :  { %154 = vst.msk [vmem:[#allocation6] sm:$0xff] %vm153_vm5, %v147_v18 }
  0x85   :  { %v48_v3 = vmul.f32 1.442695, %v47_v2 }
  0x87   :  { %217 = vpow2.f32 %v48_v3 }
  0x88   :  { %v150_v19 = vpop.f32.mrf.mxu2 }
  0x89   :  { %155 = vst.msk [vmem:[#allocation6 + $0x8] sm:$0xff] %vm153_vm5, %v150_v19 }
  0x8d   :  { %v218_v7 = vpop.eup %217 }
  0x8e   :  { %v50_v9 = vsub.f32 1.0, %v218_v7 }
  0x90   :  { %vm57_vm2 = vcmp.gt.f32.partialorder %v50_v9, %v56_v8 }
  0x91   :  { %vm58_vm3 = vmand %vm55_vm1, %vm57_vm2 }
  0x92   :  { %v207_v11 = vsel %vm58_vm3, 1.0, %v297_v10 }
  0x93   :  { %61 = vxpose.xlu0.b32.start.end [1/1] (short) (narrow) %v207_v11, 8 }
 0x137   :  { %v77_v15 = vpop.trf.xlu0 }
 0x138   :  { %v93_v16 = vadd.f32 %v207_v11, %v77_v15 }
 0x13a   :  { %v96_v17 = vsel %vm94_vm4, %v93_v16, 0.0  ;;  %95 = vst.msk [vmem:[#allocation2] sm:$0xff] %vm94_vm4, %v93_v16 }
 0x13b   :  { %97 = vadd.xlane.f32.xlu0 %v96_v17  ;;  %166 = dma.vmem_to_hbm [thread:$0]  %s162_s2, 128, %s164_s30, [#allocation3]  }
 0x1ae   :  { %v98_v20 = vpop.xlane.xlu0 %97 }
 0x1af   :  { %vm99_vm6 = vcmp.gt.f32.partialorder %v98_v20, 0.0 }
 0x1b0   :  { %v100_v21 = vsel %vm99_vm6, %v98_v20, 1.0 }
 0x1b1   :  { %219 = vrcp.f32 %v100_v21  ;;  %v112_v25 = vand.u32 2147483648, %v100_v21  ;;  %v110_v27 = vand.u32 2147483647, %v100_v21  ;;  %vm106_vm8 = vweird.f32 %v100_v21 }
 0x1b3   :  { %v113_v29 = vor.u32 1.1754944e-38, %v112_v25  ;;  %vm111_vm10 = vcmp.eq.f32.partialorder %v110_v27, 8.507059e+37 }
 0x1b7   :  { %v220_v22 = vpop.eup %219 }
 0x1b8   :  { %v102_v23 = vmul.f32 %v220_v22, %v100_v21  ;;  %vm107_vm7 = vweird.f32 %v220_v22 }
 0x1b9   :  { %vm108_vm9 = vmor %vm106_vm8, %vm107_vm7 }
 0x1ba   :  { %v103_v24 = vsub.f32 1.0, %v102_v23 }
 0x1bc   :  { %v104_v26 = vmul.f32 %v220_v22, %v103_v24 }
 0x1be   :  { %v105_v28 = vadd.f32 %v220_v22, %v104_v26 }
 0x1c0   :  { %v109_v30 = vsel %vm108_vm9, %v220_v22, %v105_v28 }
 0x1c1   :  { %v114_v31 = vsel %vm111_vm10, %v113_v29, %v109_v30 }
 0x1c2   :  { %v116_v32 = vmul.f32 %v114_v31, %v93_v16 }
 0x1c4   :  { %v119_v33 = vsel %vm99_vm6, %v116_v32, 0.125 }
 0x1c5   :  { %120 = vst.msk [vmem:[#allocation4] sm:$0xff] %vm94_vm4, %v119_v33 }
 0x1c6   :  { %177 = dma.vmem_to_hbm [thread:$0]  %s173_s8, 128, %s175_s11, [#allocation5]  }
 0x1c7   :  { %190 = dma.vmem_to_hbm [thread:$0]  %s183_s13, 256, %s185_s16, [#allocation5], %s301_s5, %s301_s5, %s302_s17  }
 0x1c8   :  { %293 = dma.done.wait [#allocation3], 128  }
 0x1c9   :  { %294 = vsyncadd [#allocation3], 4294967168 }
 0x1ca   :  { %295 = dma.done.wait [#allocation5], 384  }
 0x1cb   :  { %296 = vsyncadd [#allocation5], 4294966912 }
 0x1cc   :  { %203 = vsyncpa [#allocation3], 1 }
 0x1cd   :  { %204 = vsyncpa [#allocation5], 1 }

</bundles_post_ra>
